<compile_context>
chip_gen: v5e
topology: v5e:2x2
jax: 0.10.0
libtpu: 0.0.40
codegen_flags: <defaults>
</compile_context>

<pallas_src>
import jax
import jax.numpy as jnp
from jax.experimental import pallas as pl
from jax.experimental.pallas import tpu as pltpu

LAYER_BLOCKS = (3, 4, 6, 6, 3)


def _round_up(x, m):
    return (x + m - 1) // m * m


# ----------------------------------------------------------------------------
# Pallas kernel: (M, K)-tiled matmul with fused BN affine / residual / ReLU.
# grid = (grid_m, nk); M axis parallel, K axis arbitrary (accumulated).
# ----------------------------------------------------------------------------
def _make_conv_kernel(apply_relu: bool, has_residual: bool):
    def kernel(*refs):
        if has_residual:
            x_ref, w_ref, s_ref, b_ref, r_ref, o_ref, acc_ref = refs
        else:
            x_ref, w_ref, s_ref, b_ref, o_ref, acc_ref = refs
            r_ref = None
        kk = pl.program_id(1)

        @pl.when(kk == 0)
        def _():
            acc_ref[...] = jnp.zeros_like(acc_ref)

        acc_ref[...] += jnp.dot(x_ref[...], w_ref[...],
                                preferred_element_type=jnp.float32)

        @pl.when(kk == pl.num_programs(1) - 1)
        def _():
            y = acc_ref[...] * s_ref[...] + b_ref[...]
            if has_residual:
                y = y + r_ref[...].astype(jnp.float32)
            if apply_relu:
                y = jnp.maximum(y, 0.0)
            o_ref[...] = y.astype(o_ref.dtype)

    return kernel


# ----------------------------------------------------------------------------
# Glue: im2col (pad + strided slicing + reshape only; compute stays in Pallas)
# ----------------------------------------------------------------------------
def _im2col(x_nhwc, kh, kw, sh, sw, ph, pw):
    n, h, w, c = x_nhwc.shape
    xp = jnp.pad(x_nhwc, ((0, 0), (ph, ph), (pw, pw), (0, 0)))
    ho = (h + 2 * ph - kh) // sh + 1
    wo = (w + 2 * pw - kw) // sw + 1
    cols = []
    for i in range(kh):
        for j in range(kw):
            cols.append(xp[:, i:i + sh * (ho - 1) + 1:sh,
                           j:j + sw * (wo - 1) + 1:sw, :])
    patches = jnp.concatenate(cols, axis=-1) if len(cols) > 1 else cols[0]
    return patches.reshape(n * ho * wo, kh * kw * c), (n, ho, wo)


def _fold_weight(conv_w, cin_pad):
    """PyTorch (Cout, Cin, kh, kw) -> (kh*kw*cin_pad, Cout), zero rows for padded Cin."""
    cout, cin, kh, kw = conv_w.shape
    w = jnp.transpose(conv_w, (2, 3, 1, 0))  # (kh, kw, cin, cout)
    if cin_pad > cin:
        w = jnp.pad(w, ((0, 0), (0, 0), (0, cin_pad - cin), (0, 0)))
    return w.reshape(kh * kw * cin_pad, cout)


def conv_bn_act(x_nhwc, conv_w, bn, *, stride, padding, relu,
                residual=None, conv_bias=None, eps=1e-5):
    """Conv(no bias unless conv_bias) -> BN(folded) -> [+residual] -> [ReLU].

    x_nhwc: bf16/f32 NHWC activation whose channel dim may already be zero-padded.
    Returns an NHWC bf16 activation with channels padded to a multiple of 128.
    """
    cout, cin, kh, kw = conv_w.shape
    cp_in = x_nhwc.shape[-1]
    assert cp_in >= cin
    sh, sw = stride
    ph, pw = padding

    patches, (n, ho, wo) = _im2col(x_nhwc.astype(jnp.bfloat16), kh, kw, sh, sw, ph, pw)
    m, k = patches.shape                      # k = kh*kw*cp_in
    cp = _round_up(cout, 128)
    kp = _round_up(k, 128)

    # --- M tiling (parallel axis) ---
    tm = 512 if m >= 512 else _round_up(m, 8)
    mp = _round_up(m, tm)
    grid_m = mp // tm

    # --- K tiling (reduction axis, kept last) ---
    if kp <= 2048:
        tk = kp                               # single K step for small-K layers
    else:
        tk = next(c for c in (2048, 1024, 512, 256, 128) if kp % c == 0)
    nk = kp // tk

    if (mp, kp) != (m, k):
        patches = jnp.zeros((mp, kp), jnp.bfloat16).at[:m, :k].set(patches)

    # Folded BN affine (and optional conv bias) in f32.
    scale = bn['gamma'] * jax.lax.rsqrt(bn['var'] + eps)
    bias = bn['beta'] - bn['mean'] * scale
    if conv_bias is not None:
        bias = bias + conv_bias * scale

    wmat = _fold_weight(conv_w, cp_in)        # (k, cout) f32
    wpad = jnp.zeros((kp, cp), jnp.bfloat16).at[:k, :cout].set(wmat.astype(jnp.bfloat16))
    spad = jnp.zeros((1, cp), jnp.float32).at[:, :cout].set(scale[None, :])
    bpad = jnp.zeros((1, cp), jnp.float32).at[:, :cout].set(bias[None, :])

    in_specs = [
        pl.BlockSpec((tm, tk), lambda i, kk: (i, kk)),
        pl.BlockSpec((tk, cp), lambda i, kk: (kk, 0)),
        pl.BlockSpec((1, cp), lambda i, kk: (0, 0)),
        pl.BlockSpec((1, cp), lambda i, kk: (0, 0)),
    ]
    args = [patches, wpad, spad, bpad]
    if residual is not None:
        assert residual.shape == (n, ho, wo, cp), (residual.shape, (n, ho, wo, cp))
        rflat = residual.reshape(n * ho * wo, cp).astype(jnp.bfloat16)
        if mp != m:
            rflat = jnp.zeros((mp, cp), jnp.bfloat16).at[:m].set(rflat)
        in_specs.append(pl.BlockSpec((tm, cp), lambda i, kk: (i, 0)))
        args.append(rflat)

    kernel = _make_conv_kernel(relu, residual is not None)
    out = pl.pallas_call(
        kernel,
        out_shape=jax.ShapeDtypeStruct((mp, cp), jnp.bfloat16),
        grid_spec=pltpu.PrefetchScalarGridSpec(
            num_scalar_prefetch=0,
            grid=(grid_m, nk),
            in_specs=in_specs,
            out_specs=pl.BlockSpec((tm, cp), lambda i, kk: (i, 0)),
            scratch_shapes=[pltpu.VMEM((tm, cp), jnp.float32)],
        ),
        compiler_params=pltpu.CompilerParams(
            dimension_semantics=("parallel", "arbitrary"),
            vmem_limit_bytes=48 * 1024 * 1024),
    )(*args)
    # Keep the channel-padded layout for the next layer; only slice the M padding.
    return out[:m].reshape(n, ho, wo, cp)


# ----------------------------------------------------------------------------
# Deterministic parameter construction (shapes follow resnet45lo __init__).
# ----------------------------------------------------------------------------
def _init_conv(key, cout, cin, kh, kw):
    fan_in = cin * kh * kw
    std = (2.0 / fan_in) ** 0.5
    return jax.random.normal(key, (cout, cin, kh, kw), jnp.float32) * std


def _init_bn(c):
    return dict(gamma=jnp.ones((c,), jnp.float32),
                beta=jnp.zeros((c,), jnp.float32),
                mean=jnp.zeros((c,), jnp.float32),
                var=jnp.ones((c,), jnp.float32))


def _norm_stride(s):
    return (s, s) if isinstance(s, int) else tuple(s)


def build_feature_extractor_lo(key, strides, compress_layer, input_shape, oupch=512):
    strides = [_norm_stride(s) for s in strides]
    inpch = input_shape[0]
    planes = [32, 64, 128, 256, oupch]
    keys = iter(jax.random.split(key, 4 * sum(LAYER_BLOCKS) + 8))
    params = {
        'conv1': _init_conv(next(keys), 32, inpch, 3, 3),
        'bn1': _init_bn(32),
        'layers': [],
        'strides': strides,
        'compress_layer': compress_layer,
    }
    inplanes = 32
    for p, nb, st in zip(planes, LAYER_BLOCKS, strides[1:6]):
        blocks = []
        for bi in range(nb):
            s = st if bi == 0 else (1, 1)
            blk = {
                'stride': s,
                'conv1': _init_conv(next(keys), p, inplanes, 1, 1),
                'bn1': _init_bn(p),
                'conv2': _init_conv(next(keys), p, p, 3, 3),
                'bn2': _init_bn(p),
            }
            if s != (1, 1) or inplanes != p:
                blk['ds_conv'] = _init_conv(next(keys), p, inplanes, 1, 1)
                blk['ds_bn'] = _init_bn(p)
            blocks.append(blk)
            inplanes = p
        params['layers'].append(blocks)
    if compress_layer:
        c6 = max(oupch // 2, 1)
        params['conv6'] = _init_conv(next(keys), c6, oupch, 3, 1)
        params['conv6_bias'] = jnp.zeros((c6,), jnp.float32)
        params['bn6'] = _init_bn(c6)
    return params


# ----------------------------------------------------------------------------
# Forward pass (mirrors resnet45 forward + multiscale feature collection).
# ----------------------------------------------------------------------------
def _basic_block(x, blk):
    s = blk['stride']
    out = conv_bn_act(x, blk['conv1'], blk['bn1'],
                      stride=(1, 1), padding=(0, 0), relu=True)
    if 'ds_conv' in blk:
        residual = conv_bn_act(x, blk['ds_conv'], blk['ds_bn'],
                               stride=s, padding=(0, 0), relu=False)
    else:
        residual = x
    return conv_bn_act(out, blk['conv2'], blk['bn2'],
                       stride=s, padding=(1, 1), relu=True, residual=residual)


def feature_extractor_lo_forward(params, x_nchw):
    x = jnp.transpose(x_nchw, (0, 2, 3, 1)).astype(jnp.float32)  # NCHW -> NHWC
    strides = params['strides']
    feats = []                     # list of (channel-padded NHWC bf16, true channels)
    tmp_shape = x.shape[1:3]
    x = conv_bn_act(x, params['conv1'], params['bn1'],
                    stride=strides[0], padding=(1, 1), relu=True)
    n_stages = len(params['layers'])
    for li, blocks in enumerate(params['layers']):
        for blk in blocks:
            x = _basic_block(x, blk)
        c_true = blocks[0]['conv2'].shape[0]
        if li < n_stages - 1:
            if x.shape[1:3] != tmp_shape:
                tmp_shape = x.shape[1:3]
                feats.append((x, c_true))
        else:
            if not params['compress_layer']:
                feats.append((x, c_true))
            else:
                if x.shape[1:3] != tmp_shape:
                    tmp_shape = x.shape[1:3]
                    feats.append((x, c_true))
                x = conv_bn_act(x, params['conv6'], params['bn6'],
                                stride=(1, 1), padding=(0, 0), relu=True,
                                conv_bias=params['conv6_bias'])
                feats.append((x, params['conv6'].shape[0]))
    # Slice off channel padding and go back to NCHW f32 only for the outputs.
    return [jnp.transpose(f[..., :c], (0, 3, 1, 2)).astype(jnp.float32)
            for f, c in feats]


if __name__ == "__main__":
    key = jax.random.PRNGKey(0)
    pkey, xkey = jax.random.split(key)

    # Small shapes consistent with the module: input_shape = (C, H, W)
    strides = [(1, 1), (2, 2), (1, 1), (2, 2), (1, 1), (1, 1)]
    input_shape = (4, 16, 16)
    batch = 2
    params = build_feature_extractor_lo(pkey, strides, compress_layer=False,
                                        input_shape=input_shape, oupch=64)

    x = jax.random.uniform(xkey, (batch,) + input_shape, jnp.float32)  # NCHW
    feats = feature_extractor_lo_forward(params, x)
    feats = jax.block_until_ready(feats)

    assert len(feats) >= 1 and all(f.ndim == 4 for f in feats)
    assert all(bool(jnp.all(jnp.isfinite(f))) for f in feats)
    print("KERNEL_OK")
</pallas_src>

<mosaic_0001>
module attributes {stable_mosaic.version = 11 : i64} {
  func.func @kernel(%arg0: i32, %arg1: i32, %arg2: memref<512x128xbf16, #tpu.memory_space<vmem>>, %arg3: memref<128x128xbf16, #tpu.memory_space<vmem>>, %arg4: memref<1x128xf32, #tpu.memory_space<vmem>>, %arg5: memref<1x128xf32, #tpu.memory_space<vmem>>, %arg6: memref<512x128xbf16, #tpu.memory_space<vmem>>, %arg7: memref<512x128xf32, #tpu.memory_space<vmem>>) attributes {dimension_semantics = [#tpu.dimension_semantics<parallel>, #tpu.dimension_semantics<arbitrary>], iteration_bounds = array<i64: 1, 1>, scalar_prefetch = 0 : i64, scratch_operands = 1 : i64, tpu.core_type = #tpu.core_type<tc>, window_params = [{transform_indices = @transform_0, window_bounds = array<i64: 512, 128>}, {transform_indices = @transform_1, window_bounds = array<i64: 128, 128>}, {pipeline_mode = #tpu.pipeline_mode<synchronous>, transform_indices = @transform_2, window_bounds = array<i64: 1, 128>}, {pipeline_mode = #tpu.pipeline_mode<synchronous>, transform_indices = @transform_3, window_bounds = array<i64: 1, 128>}, {transform_indices = @transform_4, window_bounds = array<i64: 512, 128>}]} {
    %c0_i32 = arith.constant 0 : i32
    %0 = arith.cmpi eq, %arg1, %c0_i32 : i32
    %1 = arith.extui %0 : i1 to i32
    %c0_i32_0 = arith.constant 0 : i32
    %2 = arith.cmpi ne, %1, %c0_i32_0 : i32
    scf.if %2 {
      %cst_10 = arith.constant 0.000000e+00 : f32
      %12 = vector.broadcast %cst_10 : f32 to vector<512x128xf32>
      %c0_11 = arith.constant 0 : index
      %c0_12 = arith.constant 0 : index
      %13 = vector.load %arg7[%c0_11, %c0_12] : memref<512x128xf32, #tpu.memory_space<vmem>>, vector<512x128xf32>
      tpu.vector_store %arg7[%c0_11, %c0_12], %12 {strides = array<i32>} : memref<512x128xf32, #tpu.memory_space<vmem>>, vector<512x128xf32>,
    } else {
    }
    %c0 = arith.constant 0 : index
    %c0_1 = arith.constant 0 : index
    %3 = vector.load %arg7[%c0, %c0_1] : memref<512x128xf32, #tpu.memory_space<vmem>>, vector<512x128xf32>
    %c0_2 = arith.constant 0 : index
    %c0_3 = arith.constant 0 : index
    %4 = vector.load %arg2[%c0_2, %c0_3] : memref<512x128xbf16, #tpu.memory_space<vmem>>, vector<512x128xbf16>
    %c0_4 = arith.constant 0 : index
    %c0_5 = arith.constant 0 : index
    %5 = vector.load %arg3[%c0_4, %c0_5] : memref<128x128xbf16, #tpu.memory_space<vmem>>, vector<128x128xbf16>
    %cst = arith.constant dense<0.000000e+00> : vector<512x128xf32>
    %6 = tpu.matmul %4, %5, %cst {dimension_numbers = #tpu.dot_dimension_numbers<[1], [0], [0], [1], [0, 0, 1, 1], [], []>} : vector<512x128xbf16>, vector<128x128xbf16>, vector<512x128xf32> -> vector<512x128xf32>
    %7 = arith.addf %3, %6 : vector<512x128xf32>
    %c0_6 = arith.constant 0 : index
    %c0_7 = arith.constant 0 : index
    %8 = vector.load %arg7[%c0_6, %c0_7] : memref<512x128xf32, #tpu.memory_space<vmem>>, vector<512x128xf32>
    tpu.vector_store %arg7[%c0_6, %c0_7], %7 {strides = array<i32>} : memref<512x128xf32, #tpu.memory_space<vmem>>, vector<512x128xf32>,
    %c0_i32_8 = arith.constant 0 : i32
    %9 = arith.cmpi eq, %arg1, %c0_i32_8 : i32
    %10 = arith.extui %9 : i1 to i32
    %c0_i32_9 = arith.constant 0 : i32
    %11 = arith.cmpi ne, %10, %c0_i32_9 : i32
    scf.if %11 {
      %c0_10 = arith.constant 0 : index
      %c0_11 = arith.constant 0 : index
      %12 = vector.load %arg7[%c0_10, %c0_11] : memref<512x128xf32, #tpu.memory_space<vmem>>, vector<512x128xf32>
      %c0_12 = arith.constant 0 : index
      %c0_13 = arith.constant 0 : index
      %13 = vector.load %arg4[%c0_12, %c0_13] : memref<1x128xf32, #tpu.memory_space<vmem>>, vector<1x128xf32>
      %14 = vector.broadcast %13 : vector<1x128xf32> to vector<512x128xf32>
      %15 = arith.mulf %12, %14 : vector<512x128xf32>
      %c0_14 = arith.constant 0 : index
      %c0_15 = arith.constant 0 : index
      %16 = vector.load %arg5[%c0_14, %c0_15] : memref<1x128xf32, #tpu.memory_space<vmem>>, vector<1x128xf32>
      %17 = vector.broadcast %16 : vector<1x128xf32> to vector<512x128xf32>
      %18 = arith.addf %15, %17 : vector<512x128xf32>
      %cst_16 = arith.constant 0.000000e+00 : f32
      %19 = vector.broadcast %cst_16 : f32 to vector<512x128xf32>
      %20 = arith.maximumf %18, %19 : vector<512x128xf32>
      %21 = arith.truncf %20 : vector<512x128xf32> to vector<512x128xbf16>
      %c0_17 = arith.constant 0 : index
      %c0_18 = arith.constant 0 : index
      %22 = vector.load %arg6[%c0_17, %c0_18] : memref<512x128xbf16, #tpu.memory_space<vmem>>, vector<512x128xbf16>
      tpu.vector_store %arg6[%c0_17, %c0_18], %21 {strides = array<i32>} : memref<512x128xbf16, #tpu.memory_space<vmem>>, vector<512x128xbf16>,
    } else {
    }
    return
  }
  func.func @transform_0(%arg0: i32, %arg1: i32) -> (i32, i32) {
    %c0_i32 = arith.constant 0 : i32
    return %arg0, %arg1 : i32, i32
  }
  func.func @transform_1(%arg0: i32, %arg1: i32) -> (i32, i32) {
    %c0_i32 = arith.constant 0 : i32
    %c0_i32_0 = arith.constant 0 : i32
    return %arg1, %c0_i32 : i32, i32
  }
  func.func @transform_2(%arg0: i32, %arg1: i32) -> (i32, i32) {
    %c0_i32 = arith.constant 0 : i32
    %c0_i32_0 = arith.constant 0 : i32
    %c0_i32_1 = arith.constant 0 : i32
    return %c0_i32, %c0_i32_0 : i32, i32
  }
  func.func @transform_3(%arg0: i32, %arg1: i32) -> (i32, i32) {
    %c0_i32 = arith.constant 0 : i32
    %c0_i32_0 = arith.constant 0 : i32
    %c0_i32_1 = arith.constant 0 : i32
    return %c0_i32, %c0_i32_0 : i32, i32
  }
  func.func @transform_4(%arg0: i32, %arg1: i32) -> (i32, i32) {
    %c0_i32 = arith.constant 0 : i32
    %c0_i32_0 = arith.constant 0 : i32
    return %arg0, %c0_i32 : i32, i32
  }
}

</mosaic_0001>

<bundles_post_ra>
// kernel: tpu_custom_call.1
= control target key start
LH: loop header
LB: loop body
LE: loop exit
PB: predicated region body
PF: predicated region fallthrough
CT: control target
= control target key end

     0   :  { %9 = vsyncpa [#allocation4], 0  ;;  %s1900_s0 = inlined_call_operand.hbm [shape: bf16[512,128], index: 0, kind: input, shape index: {}]   ;;  %s1901_s1 = inlined_call_operand.hbm [shape: bf16[128,128], index: 1, kind: input, shape index: {}]   ;;  %s1902_s2 = inlined_call_operand.vmem [shape: f32[1,128], index: 2, kind: input, shape index: {}]   ;;  %s1903_s3 = inlined_call_operand.vmem [shape: f32[1,128], index: 3, kind: input, shape index: {}]   ;;  %s1904_s4 = inlined_call_operand.hbm [shape: bf16[512,128], index: 4, kind: output, shape index: {}]  }
   0x1   :  { %10 = vsyncpa [#allocation7], 0 }
   0x2   :  { %11 = vsyncpa [#allocation5], 0  ;;  %s16_s17 = sshll.u32 %s1900_s0, 4  ;;  %s1714_s18 = smov [#allocation3]   ;;  %s17_s17 = int_to_ptr.hbm [resolvable:$true] %s16_s17 }
   0x3   :  { %s18_s19 = sshll.u32 %s1714_s18, 4  ;;  %s29_s22 = sshll.u32 %s1901_s1, 4  ;;  %s19_s19 = int_to_ptr.vmem [resolvable:$true] %s18_s19  ;;  %s30_s22 = int_to_ptr.hbm [resolvable:$true] %s29_s22 }
   0x4   :  { %s1715_s23 = smov 64   ;;  %s1716_s24 = smov 4  }
   0x5   :  { %24 = dma.hbm_to_vmem [thread:$0]  %s17_s17, 4096, %s19_s19, [#allocation4], %s1715_s23, %s1715_s23, %s1716_s24  }
   0x6   :  { %s1717_s25 = smov [#allocation6]  }
   0x7   :  { %s31_s26 = sshll.u32 %s1717_s25, 4  ;;  %s32_s26 = int_to_ptr.vmem [resolvable:$true] %s31_s26 }
   0x8   :  { %37 = dma.hbm_to_vmem [thread:$0]  %s30_s22, 1024, %s32_s26, [#allocation7], %s1715_s23, %s1715_s23, %s1716_s24  }
   0x9   :  { %1708 = dma.done.wait [#allocation4], 4096  }
   0xa   :  { %1709 = vsyncadd [#allocation4], 4294963200 }
   0xb   :  { %1710 = dma.done.wait [#allocation7], 1024  }
   0xc   :  { %1711 = vsyncadd [#allocation7], 4294966272  ;;  %v1413_v0 = vld [vmem:[#allocation6 + $0x38] sm:$0xff]  ;;  %v1412_v1 = vld [vmem:[#allocation6 + $0x30] sm:$0xff]  ;;  %s1200_s5 = sshll.u32 %s1904_s4, 4  ;;  %s1201_s5 = int_to_ptr.hbm [resolvable:$true] %s1200_s5 }
   0xd   :  { %502 = vmatpush.bf16.msra.mxu0 %v1413_v0  ;;  %1605 = vmatpush.bf16.msra.mxu1 %v1413_v0  ;;  %v1411_v2 = vld [vmem:[#allocation6 + $0x28] sm:$0xff]  ;;  %v1410_v3 = vld [vmem:[#allocation6 + $0x20] sm:$0xff]  ;;  %v1409_v4 = vld [vmem:[#allocation6 + $0x18] sm:$0xff] }
   0xe   :  { %1606 = vmatpush.bf16.msra.mxu2 %v1413_v0  ;;  %1607 = vmatpush.bf16.msra.mxu3 %v1413_v0  ;;  %v1408_v5 = vld [vmem:[#allocation6 + $0x10] sm:$0xff]  ;;  %v1407_v6 = vld [vmem:[#allocation6 + $0x8] sm:$0xff]  ;;  %v1406_v7 = vld [vmem:[#allocation6] sm:$0xff] }
   0xf   :  { %v1374_v8 = vld [vmem:[#allocation3] sm:$0xff]  ;;  %v1375_v12 = vld [vmem:[#allocation3 + $0x8] sm:$0xff]  ;;  %v1376_v16 = vld [vmem:[#allocation3 + $0x10] sm:$0xff] }
  0x10   :  { %v1382_v9 = vld [vmem:[#allocation3 + $0x40] sm:$0xff]  ;;  %v1383_v13 = vld [vmem:[#allocation3 + $0x48] sm:$0xff]  ;;  %v1384_v17 = vld [vmem:[#allocation3 + $0x50] sm:$0xff] }
  0x11   :  { %503 = vmatpush.bf16.msra.mxu0 %v1412_v1  ;;  %1608 = vmatpush.bf16.msra.mxu1 %v1412_v1  ;;  %v1390_v10 = vld [vmem:[#allocation3 + $0x80] sm:$0xff]  ;;  %v1391_v14 = vld [vmem:[#allocation3 + $0x88] sm:$0xff]  ;;  %v1392_v18 = vld [vmem:[#allocation3 + $0x90] sm:$0xff] }
  0x12   :  { %1609 = vmatpush.bf16.msra.mxu2 %v1412_v1  ;;  %1610 = vmatpush.bf16.msra.mxu3 %v1412_v1  ;;  %v1398_v11 = vld [vmem:[#allocation3 + $0xc0] sm:$0xff]  ;;  %v1399_v15 = vld [vmem:[#allocation3 + $0xc8] sm:$0xff]  ;;  %v1400_v19 = vld [vmem:[#allocation3 + $0xd0] sm:$0xff] }
  0x13   :  { %v1377_v20 = vld [vmem:[#allocation3 + $0x18] sm:$0xff]  ;;  %v1378_v24 = vld [vmem:[#allocation3 + $0x20] sm:$0xff]  ;;  %v1379_v28 = vld [vmem:[#allocation3 + $0x28] sm:$0xff] }
  0x14   :  { %v1385_v21 = vld [vmem:[#allocation3 + $0x58] sm:$0xff]  ;;  %v1386_v25 = vld [vmem:[#allocation3 + $0x60] sm:$0xff]  ;;  %v1387_v29 = vld [vmem:[#allocation3 + $0x68] sm:$0xff] }
  0x15   :  { %504 = vmatpush.bf16.msra.mxu0 %v1411_v2  ;;  %1611 = vmatpush.bf16.msra.mxu1 %v1411_v2  ;;  %v1393_v22 = vld [vmem:[#allocation3 + $0x98] sm:$0xff]  ;;  %v1394_v26 = vld [vmem:[#allocation3 + $0xa0] sm:$0xff]  ;;  %v1395_v30 = vld [vmem:[#allocation3 + $0xa8] sm:$0xff] }
  0x16   :  { %1612 = vmatpush.bf16.msra.mxu2 %v1411_v2  ;;  %1613 = vmatpush.bf16.msra.mxu3 %v1411_v2  ;;  %v1401_v23 = vld [vmem:[#allocation3 + $0xd8] sm:$0xff]  ;;  %v1402_v27 = vld [vmem:[#allocation3 + $0xe0] sm:$0xff]  ;;  %v1403_v31 = vld [vmem:[#allocation3 + $0xe8] sm:$0xff] }
  0x17   :  { %v1380_v32 = vld [vmem:[#allocation3 + $0x30] sm:$0xff]  ;;  %v1381_v36 = vld [vmem:[#allocation3 + $0x38] sm:$0xff]  ;;  %v1759_v42 = vld [vmem:[%s1902_s2] ss:$0 sm:$0xff]  ;;  %s1718_s2 = smov [#allocation8]  }
  0x18   :  { %v1388_v33 = vld [vmem:[#allocation3 + $0x70] sm:$0xff]  ;;  %v1389_v37 = vld [vmem:[#allocation3 + $0x78] sm:$0xff]  ;;  %v1765_v44 = vld [vmem:[%s1903_s3] ss:$0 sm:$0xff]  ;;  %s1198_s3 = sshll.u32 %s1718_s2, 4  ;;  %s1199_s3 = int_to_ptr.vmem [resolvable:$true] %s1198_s3 }
  0x19   :  { %505 = vmatpush.bf16.msra.mxu0 %v1410_v3  ;;  %1614 = vmatpush.bf16.msra.mxu1 %v1410_v3  ;;  %v1396_v34 = vld [vmem:[#allocation3 + $0xb0] sm:$0xff]  ;;  %v1397_v38 = vld [vmem:[#allocation3 + $0xb8] sm:$0xff] }
  0x1a   :  { %1615 = vmatpush.bf16.msra.mxu2 %v1410_v3  ;;  %1616 = vmatpush.bf16.msra.mxu3 %v1410_v3  ;;  %v1404_v35 = vld [vmem:[#allocation3 + $0xf0] sm:$0xff]  ;;  %v1405_v39 = vld [vmem:[#allocation3 + $0xf8] sm:$0xff] }
  0x1d   :  { %506 = vmatpush.bf16.msra.mxu0 %v1409_v4  ;;  %1617 = vmatpush.bf16.msra.mxu1 %v1409_v4 }
  0x1e   :  { %1618 = vmatpush.bf16.msra.mxu2 %v1409_v4  ;;  %1619 = vmatpush.bf16.msra.mxu3 %v1409_v4 }
  0x21   :  { %507 = vmatpush.bf16.msra.mxu0 %v1408_v5  ;;  %1620 = vmatpush.bf16.msra.mxu1 %v1408_v5 }
  0x22   :  { %1621 = vmatpush.bf16.msra.mxu2 %v1408_v5  ;;  %1622 = vmatpush.bf16.msra.mxu3 %v1408_v5 }
  0x25   :  { %508 = vmatpush.bf16.msra.mxu0 %v1407_v6  ;;  %1623 = vmatpush.bf16.msra.mxu1 %v1407_v6 }
  0x26   :  { %1624 = vmatpush.bf16.msra.mxu2 %v1407_v6  ;;  %1625 = vmatpush.bf16.msra.mxu3 %v1407_v6 }
  0x29   :  { %509 = vmatpush.bf16.msra.mxu0 %v1406_v7  ;;  %1626 = vmatpush.bf16.msra.mxu1 %v1406_v7 }
  0x2a   :  { %1627 = vmatpush.bf16.msra.mxu2 %v1406_v7  ;;  %1628 = vmatpush.bf16.msra.mxu3 %v1406_v7 }
  0x2c   :  { %510 = vmatmul.bf16.vlgmr.msra.gmra.mxu0 %v1374_v8  ;;  %550 = vmatmul.bf16.vlgmr.msra.gmra.mxu1 %v1382_v9 }
  0x2d   :  { %590 = vmatmul.bf16.vlgmr.msra.gmra.mxu2 %v1390_v10  ;;  %630 = vmatmul.bf16.vlgmr.msra.gmra.mxu3 %v1398_v11 }
  0x3c   :  { %515 = vmatmul.bf16.gmra.mxu0 %v1375_v12  ;;  %555 = vmatmul.bf16.gmra.mxu1 %v1383_v13 }
  0x3d   :  { %595 = vmatmul.bf16.gmra.mxu2 %v1391_v14  ;;  %635 = vmatmul.bf16.gmra.mxu3 %v1399_v15 }
  0x4c   :  { %520 = vmatmul.bf16.gmra.mxu0 %v1376_v16  ;;  %560 = vmatmul.bf16.gmra.mxu1 %v1384_v17 }
  0x4d   :  { %600 = vmatmul.bf16.gmra.mxu2 %v1392_v18  ;;  %640 = vmatmul.bf16.gmra.mxu3 %v1400_v19 }
  0x5c   :  { %525 = vmatmul.bf16.gmra.mxu0 %v1377_v20  ;;  %565 = vmatmul.bf16.gmra.mxu1 %v1385_v21 }
  0x5d   :  { %605 = vmatmul.bf16.gmra.mxu2 %v1393_v22  ;;  %645 = vmatmul.bf16.gmra.mxu3 %v1401_v23 }
  0x6c   :  { %530 = vmatmul.bf16.gmra.mxu0 %v1378_v24  ;;  %570 = vmatmul.bf16.gmra.mxu1 %v1386_v25 }
  0x6d   :  { %610 = vmatmul.bf16.gmra.mxu2 %v1394_v26  ;;  %650 = vmatmul.bf16.gmra.mxu3 %v1402_v27 }
  0x7c   :  { %535 = vmatmul.bf16.gmra.mxu0 %v1379_v28  ;;  %575 = vmatmul.bf16.gmra.mxu1 %v1387_v29 }
  0x7d   :  { %615 = vmatmul.bf16.gmra.mxu2 %v1395_v30  ;;  %655 = vmatmul.bf16.gmra.mxu3 %v1403_v31 }
  0x8c   :  { %540 = vmatmul.bf16.gmra.mxu0 %v1380_v32  ;;  %580 = vmatmul.bf16.gmra.mxu1 %v1388_v33 }
  0x8d   :  { %620 = vmatmul.bf16.gmra.mxu2 %v1396_v34  ;;  %660 = vmatmul.bf16.gmra.mxu3 %v1404_v35 }
  0x9c   :  { %545 = vmatmul.bf16.gmra.mxu0 %v1381_v36  ;;  %585 = vmatmul.bf16.gmra.mxu1 %v1389_v37 }
  0x9d   :  { %625 = vmatmul.bf16.gmra.mxu2 %v1397_v38  ;;  %665 = vmatmul.bf16.gmra.mxu3 %v1405_v39 }
  0xa9   :  { %v511_v40 = vpop.f32.mrf.mxu0  ;;  %v551_v41 = vpop.f32.mrf.mxu1 }
  0xaa   :  { %v870_v43 = vmul.f32 %v1759_v42, %v511_v40  ;;  %v886_v45 = vmul.f32 %v1759_v42, %v551_v41 }
  0xac   :  { %v938_v50 = vadd.f32 %v1765_v44, %v870_v43  ;;  %v954_v51 = vadd.f32 %v1765_v44, %v886_v45 }
  0xae   :  { %v1002_v58 = vmax.f32 %v938_v50, 0.0  ;;  %v1018_v59 = vmax.f32 %v954_v51, 0.0 }
  0xb0   :  { %v591_v46 = vpop.f32.mrf.mxu2  ;;  %v631_v47 = vpop.f32.mrf.mxu3 }
  0xb1   :  { %v513_v48 = vpop.f32.mrf.mxu0  ;;  %v553_v49 = vpop.f32.mrf.mxu1  ;;  %v902_v56 = vmul.f32 %v1759_v42, %v591_v46  ;;  %v918_v57 = vmul.f32 %v1759_v42, %v631_v47 }
  0xb2   :  { %v871_v52 = vmul.f32 %v1759_v42, %v513_v48  ;;  %v887_v53 = vmul.f32 %v1759_v42, %v553_v49 }
  0xb3   :  { %v970_v2 = vadd.f32 %v1765_v44, %v902_v56  ;;  %v986_v3 = vadd.f32 %v1765_v44, %v918_v57 }
  0xb4   :  { %v939_v54 = vadd.f32 %v1765_v44, %v871_v52  ;;  %v955_v55 = vadd.f32 %v1765_v44, %v887_v53 }
  0xb5   :  { %v1034_v10 = vmax.f32 %v970_v2, 0.0  ;;  %v1050_v11 = vmax.f32 %v986_v3, 0.0 }
  0xb6   :  { %v1003_v60 = vmax.f32 %v939_v54, 0.0  ;;  %v1019_v61 = vmax.f32 %v955_v55, 0.0 }
  0xb8   :  { %v1417_v62 = vpack.c.bf16 %v1003_v60, %v1002_v58  ;;  %v1457_v63 = vpack.c.bf16 %v1019_v61, %v1018_v59  ;;  %v593_v0 = vpop.f32.mrf.mxu2  ;;  %v633_v1 = vpop.f32.mrf.mxu3 }
  0xb9   :  { %v903_v4 = vmul.f32 %v1759_v42, %v593_v0  ;;  %v919_v5 = vmul.f32 %v1759_v42, %v633_v1  ;;  %v516_v6 = vpop.f32.mrf.mxu0  ;;  %v556_v7 = vpop.f32.mrf.mxu1 }
  0xba   :  { %1418 = vst [vmem:[#allocation8] sm:$0xff] %v1417_v62   ;;  %v872_v14 = vmul.f32 %v1759_v42, %v516_v6  ;;  %v888_v15 = vmul.f32 %v1759_v42, %v556_v7 }
  0xbb   :  { %1581 = vst [vmem:[#allocation8 + $0x40] sm:$0xff] %v1457_v63   ;;  %v971_v8 = vadd.f32 %v1765_v44, %v903_v4  ;;  %v987_v9 = vadd.f32 %v1765_v44, %v919_v5 }
  0xbc   :  { %v940_v22 = vadd.f32 %v1765_v44, %v872_v14  ;;  %v956_v23 = vadd.f32 %v1765_v44, %v888_v15 }
  0xbd   :  { %v1035_v12 = vmax.f32 %v971_v8, 0.0  ;;  %v1051_v13 = vmax.f32 %v987_v9, 0.0 }
  0xbe   :  { %v1004_v30 = vmax.f32 %v940_v22, 0.0  ;;  %v1020_v31 = vmax.f32 %v956_v23, 0.0 }
  0xbf   :  { %v1497_v16 = vpack.c.bf16 %v1035_v12, %v1034_v10  ;;  %v1537_v17 = vpack.c.bf16 %v1051_v13, %v1050_v11 }
  0xc0   :  { %v596_v18 = vpop.f32.mrf.mxu2  ;;  %v636_v19 = vpop.f32.mrf.mxu3 }
  0xc1   :  { %1589 = vst [vmem:[#allocation8 + $0x80] sm:$0xff] %v1497_v16   ;;  %v518_v20 = vpop.f32.mrf.mxu0  ;;  %v558_v21 = vpop.f32.mrf.mxu1  ;;  %v904_v28 = vmul.f32 %v1759_v42, %v596_v18  ;;  %v920_v29 = vmul.f32 %v1759_v42, %v636_v19 }
  0xc2   :  { %1597 = vst [vmem:[#allocation8 + $0xc0] sm:$0xff] %v1537_v17   ;;  %v873_v24 = vmul.f32 %v1759_v42, %v518_v20  ;;  %v889_v25 = vmul.f32 %v1759_v42, %v558_v21 }
  0xc3   :  { %v972_v38 = vadd.f32 %v1765_v44, %v904_v28  ;;  %v988_v39 = vadd.f32 %v1765_v44, %v920_v29 }
  0xc4   :  { %v941_v26 = vadd.f32 %v1765_v44, %v873_v24  ;;  %v957_v27 = vadd.f32 %v1765_v44, %v889_v25 }
  0xc5   :  { %v1036_v48 = vmax.f32 %v972_v38, 0.0  ;;  %v1052_v49 = vmax.f32 %v988_v39, 0.0 }
  0xc6   :  { %v1005_v32 = vmax.f32 %v941_v26, 0.0  ;;  %v1021_v33 = vmax.f32 %v957_v27, 0.0 }
  0xc8   :  { %v1422_v34 = vpack.c.bf16 %v1005_v32, %v1004_v30  ;;  %v1462_v35 = vpack.c.bf16 %v1021_v33, %v1020_v31  ;;  %v598_v36 = vpop.f32.mrf.mxu2  ;;  %v638_v37 = vpop.f32.mrf.mxu3 }
  0xc9   :  { %v905_v40 = vmul.f32 %v1759_v42, %v598_v36  ;;  %v921_v41 = vmul.f32 %v1759_v42, %v638_v37  ;;  %v521_v43 = vpop.f32.mrf.mxu0  ;;  %v561_v45 = vpop.f32.mrf.mxu1 }
  0xca   :  { %1574 = vst [vmem:[#allocation8 + $0x8] sm:$0xff] %v1422_v34   ;;  %v874_v52 = vmul.f32 %v1759_v42, %v521_v43  ;;  %v890_v53 = vmul.f32 %v1759_v42, %v561_v45 }
  0xcb   :  { %1582 = vst [vmem:[#allocation8 + $0x48] sm:$0xff] %v1462_v35   ;;  %v973_v46 = vadd.f32 %v1765_v44, %v905_v40  ;;  %v989_v47 = vadd.f32 %v1765_v44, %v921_v41 }
  0xcc   :  { %v942_v60 = vadd.f32 %v1765_v44, %v874_v52  ;;  %v958_v61 = vadd.f32 %v1765_v44, %v890_v53 }
  0xcd   :  { %v1037_v50 = vmax.f32 %v973_v46, 0.0  ;;  %v1053_v51 = vmax.f32 %v989_v47, 0.0 }
  0xce   :  { %v1006_v4 = vmax.f32 %v942_v60, 0.0  ;;  %v1022_v5 = vmax.f32 %v958_v61, 0.0 }
  0xcf   :  { %v1502_v54 = vpack.c.bf16 %v1037_v50, %v1036_v48  ;;  %v1542_v55 = vpack.c.bf16 %v1053_v51, %v1052_v49 }
  0xd0   :  { %v601_v56 = vpop.f32.mrf.mxu2  ;;  %v641_v57 = vpop.f32.mrf.mxu3 }
  0xd1   :  { %1590 = vst [vmem:[#allocation8 + $0x88] sm:$0xff] %v1502_v54   ;;  %v523_v58 = vpop.f32.mrf.mxu0  ;;  %v563_v59 = vpop.f32.mrf.mxu1  ;;  %v906_v2 = vmul.f32 %v1759_v42, %v601_v56  ;;  %v922_v3 = vmul.f32 %v1759_v42, %v641_v57 }
  0xd2   :  { %1598 = vst [vmem:[#allocation8 + $0xc8] sm:$0xff] %v1542_v55   ;;  %v875_v62 = vmul.f32 %v1759_v42, %v523_v58  ;;  %v891_v63 = vmul.f32 %v1759_v42, %v563_v59 }
  0xd3   :  { %v974_v12 = vadd.f32 %v1765_v44, %v906_v2  ;;  %v990_v13 = vadd.f32 %v1765_v44, %v922_v3 }
  0xd4   :  { %v943_v0 = vadd.f32 %v1765_v44, %v875_v62  ;;  %v959_v1 = vadd.f32 %v1765_v44, %v891_v63 }
  0xd5   :  { %v1038_v20 = vmax.f32 %v974_v12, 0.0  ;;  %v1054_v21 = vmax.f32 %v990_v13, 0.0 }
  0xd6   :  { %v1007_v6 = vmax.f32 %v943_v0, 0.0  ;;  %v1023_v7 = vmax.f32 %v959_v1, 0.0 }
  0xd8   :  { %v1427_v8 = vpack.c.bf16 %v1007_v6, %v1006_v4  ;;  %v1467_v9 = vpack.c.bf16 %v1023_v7, %v1022_v5  ;;  %v603_v10 = vpop.f32.mrf.mxu2  ;;  %v643_v11 = vpop.f32.mrf.mxu3 }
  0xd9   :  { %v907_v14 = vmul.f32 %v1759_v42, %v603_v10  ;;  %v923_v15 = vmul.f32 %v1759_v42, %v643_v11  ;;  %v526_v16 = vpop.f32.mrf.mxu0  ;;  %v566_v17 = vpop.f32.mrf.mxu1 }
  0xda   :  { %1575 = vst [vmem:[#allocation8 + $0x10] sm:$0xff] %v1427_v8   ;;  %v876_v24 = vmul.f32 %v1759_v42, %v526_v16  ;;  %v892_v25 = vmul.f32 %v1759_v42, %v566_v17 }
  0xdb   :  { %1583 = vst [vmem:[#allocation8 + $0x50] sm:$0xff] %v1467_v9   ;;  %v975_v18 = vadd.f32 %v1765_v44, %v907_v14  ;;  %v991_v19 = vadd.f32 %v1765_v44, %v923_v15 }
  0xdc   :  { %v944_v32 = vadd.f32 %v1765_v44, %v876_v24  ;;  %v960_v33 = vadd.f32 %v1765_v44, %v892_v25 }
  0xdd   :  { %v1039_v22 = vmax.f32 %v975_v18, 0.0  ;;  %v1055_v23 = vmax.f32 %v991_v19, 0.0 }
  0xde   :  { %v1008_v40 = vmax.f32 %v944_v32, 0.0  ;;  %v1024_v41 = vmax.f32 %v960_v33, 0.0 }
  0xdf   :  { %v1507_v26 = vpack.c.bf16 %v1039_v22, %v1038_v20  ;;  %v1547_v27 = vpack.c.bf16 %v1055_v23, %v1054_v21 }
  0xe0   :  { %v606_v28 = vpop.f32.mrf.mxu2  ;;  %v646_v29 = vpop.f32.mrf.mxu3 }
  0xe1   :  { %1591 = vst [vmem:[#allocation8 + $0x90] sm:$0xff] %v1507_v26   ;;  %v528_v30 = vpop.f32.mrf.mxu0  ;;  %v568_v31 = vpop.f32.mrf.mxu1  ;;  %v908_v38 = vmul.f32 %v1759_v42, %v606_v28  ;;  %v924_v39 = vmul.f32 %v1759_v42, %v646_v29 }
  0xe2   :  { %1599 = vst [vmem:[#allocation8 + $0xd0] sm:$0xff] %v1547_v27   ;;  %v877_v34 = vmul.f32 %v1759_v42, %v528_v30  ;;  %v893_v35 = vmul.f32 %v1759_v42, %v568_v31 }
  0xe3   :  { %v976_v50 = vadd.f32 %v1765_v44, %v908_v38  ;;  %v992_v51 = vadd.f32 %v1765_v44, %v924_v39 }
  0xe4   :  { %v945_v36 = vadd.f32 %v1765_v44, %v877_v34  ;;  %v961_v37 = vadd.f32 %v1765_v44, %v893_v35 }
  0xe5   :  { %v1040_v58 = vmax.f32 %v976_v50, 0.0  ;;  %v1056_v59 = vmax.f32 %v992_v51, 0.0 }
  0xe6   :  { %v1009_v43 = vmax.f32 %v945_v36, 0.0  ;;  %v1025_v45 = vmax.f32 %v961_v37, 0.0 }
  0xe8   :  { %v1432_v46 = vpack.c.bf16 %v1009_v43, %v1008_v40  ;;  %v1472_v47 = vpack.c.bf16 %v1025_v45, %v1024_v41  ;;  %v608_v48 = vpop.f32.mrf.mxu2  ;;  %v648_v49 = vpop.f32.mrf.mxu3 }
  0xe9   :  { %v909_v52 = vmul.f32 %v1759_v42, %v608_v48  ;;  %v925_v53 = vmul.f32 %v1759_v42, %v648_v49  ;;  %v531_v54 = vpop.f32.mrf.mxu0  ;;  %v571_v55 = vpop.f32.mrf.mxu1 }
  0xea   :  { %1576 = vst [vmem:[#allocation8 + $0x18] sm:$0xff] %v1432_v46   ;;  %v878_v62 = vmul.f32 %v1759_v42, %v531_v54  ;;  %v894_v63 = vmul.f32 %v1759_v42, %v571_v55 }
  0xeb   :  { %1584 = vst [vmem:[#allocation8 + $0x58] sm:$0xff] %v1472_v47   ;;  %v977_v56 = vadd.f32 %v1765_v44, %v909_v52  ;;  %v993_v57 = vadd.f32 %v1765_v44, %v925_v53 }
  0xec   :  { %v946_v6 = vadd.f32 %v1765_v44, %v878_v62  ;;  %v962_v7 = vadd.f32 %v1765_v44, %v894_v63 }
  0xed   :  { %v1041_v60 = vmax.f32 %v977_v56, 0.0  ;;  %v1057_v61 = vmax.f32 %v993_v57, 0.0 }
  0xee   :  { %v1010_v14 = vmax.f32 %v946_v6, 0.0  ;;  %v1026_v15 = vmax.f32 %v962_v7, 0.0 }
  0xef   :  { %v1512_v0 = vpack.c.bf16 %v1041_v60, %v1040_v58  ;;  %v1552_v1 = vpack.c.bf16 %v1057_v61, %v1056_v59 }
  0xf0   :  { %v611_v2 = vpop.f32.mrf.mxu2  ;;  %v651_v3 = vpop.f32.mrf.mxu3 }
  0xf1   :  { %1592 = vst [vmem:[#allocation8 + $0x98] sm:$0xff] %v1512_v0   ;;  %v533_v4 = vpop.f32.mrf.mxu0  ;;  %v573_v5 = vpop.f32.mrf.mxu1  ;;  %v910_v12 = vmul.f32 %v1759_v42, %v611_v2  ;;  %v926_v13 = vmul.f32 %v1759_v42, %v651_v3 }
  0xf2   :  { %1600 = vst [vmem:[#allocation8 + $0xd8] sm:$0xff] %v1552_v1   ;;  %v879_v8 = vmul.f32 %v1759_v42, %v533_v4  ;;  %v895_v9 = vmul.f32 %v1759_v42, %v573_v5 }
  0xf3   :  { %v978_v22 = vadd.f32 %v1765_v44, %v910_v12  ;;  %v994_v23 = vadd.f32 %v1765_v44, %v926_v13 }
  0xf4   :  { %v947_v10 = vadd.f32 %v1765_v44, %v879_v8  ;;  %v963_v11 = vadd.f32 %v1765_v44, %v895_v9 }
  0xf5   :  { %v1042_v30 = vmax.f32 %v978_v22, 0.0  ;;  %v1058_v31 = vmax.f32 %v994_v23, 0.0 }
  0xf6   :  { %v1011_v16 = vmax.f32 %v947_v10, 0.0  ;;  %v1027_v17 = vmax.f32 %v963_v11, 0.0 }
  0xf8   :  { %v1437_v18 = vpack.c.bf16 %v1011_v16, %v1010_v14  ;;  %v1477_v19 = vpack.c.bf16 %v1027_v17, %v1026_v15  ;;  %v613_v20 = vpop.f32.mrf.mxu2  ;;  %v653_v21 = vpop.f32.mrf.mxu3 }
  0xf9   :  { %v911_v24 = vmul.f32 %v1759_v42, %v613_v20  ;;  %v927_v25 = vmul.f32 %v1759_v42, %v653_v21  ;;  %v536_v26 = vpop.f32.mrf.mxu0  ;;  %v576_v27 = vpop.f32.mrf.mxu1 }
  0xfa   :  { %1577 = vst [vmem:[#allocation8 + $0x20] sm:$0xff] %v1437_v18   ;;  %v880_v34 = vmul.f32 %v1759_v42, %v536_v26  ;;  %v896_v35 = vmul.f32 %v1759_v42, %v576_v27 }
  0xfb   :  { %1585 = vst [vmem:[#allocation8 + $0x60] sm:$0xff] %v1477_v19   ;;  %v979_v28 = vadd.f32 %v1765_v44, %v911_v24  ;;  %v995_v29 = vadd.f32 %v1765_v44, %v927_v25 }
  0xfc   :  { %v948_v43 = vadd.f32 %v1765_v44, %v880_v34  ;;  %v964_v45 = vadd.f32 %v1765_v44, %v896_v35 }
  0xfd   :  { %v1043_v32 = vmax.f32 %v979_v28, 0.0  ;;  %v1059_v33 = vmax.f32 %v995_v29, 0.0 }
  0xfe   :  { %v1012_v52 = vmax.f32 %v948_v43, 0.0  ;;  %v1028_v53 = vmax.f32 %v964_v45, 0.0 }
  0xff   :  { %v1517_v36 = vpack.c.bf16 %v1043_v32, %v1042_v30  ;;  %v1557_v37 = vpack.c.bf16 %v1059_v33, %v1058_v31 }
 0x100   :  { %v616_v38 = vpop.f32.mrf.mxu2  ;;  %v656_v39 = vpop.f32.mrf.mxu3 }
 0x101   :  { %1593 = vst [vmem:[#allocation8 + $0xa0] sm:$0xff] %v1517_v36   ;;  %v538_v40 = vpop.f32.mrf.mxu0  ;;  %v578_v41 = vpop.f32.mrf.mxu1  ;;  %v912_v50 = vmul.f32 %v1759_v42, %v616_v38  ;;  %v928_v51 = vmul.f32 %v1759_v42, %v656_v39 }
 0x102   :  { %1601 = vst [vmem:[#allocation8 + $0xe0] sm:$0xff] %v1557_v37   ;;  %v881_v46 = vmul.f32 %v1759_v42, %v538_v40  ;;  %v897_v47 = vmul.f32 %v1759_v42, %v578_v41 }
 0x103   :  { %v980_v60 = vadd.f32 %v1765_v44, %v912_v50  ;;  %v996_v61 = vadd.f32 %v1765_v44, %v928_v51 }
 0x104   :  { %v949_v48 = vadd.f32 %v1765_v44, %v881_v46  ;;  %v965_v49 = vadd.f32 %v1765_v44, %v897_v47 }
 0x105   :  { %v1044_v4 = vmax.f32 %v980_v60, 0.0  ;;  %v1060_v5 = vmax.f32 %v996_v61, 0.0 }
 0x106   :  { %v1013_v54 = vmax.f32 %v949_v48, 0.0  ;;  %v1029_v55 = vmax.f32 %v965_v49, 0.0 }
 0x108   :  { %v1442_v56 = vpack.c.bf16 %v1013_v54, %v1012_v52  ;;  %v1482_v57 = vpack.c.bf16 %v1029_v55, %v1028_v53  ;;  %v618_v58 = vpop.f32.mrf.mxu2  ;;  %v658_v59 = vpop.f32.mrf.mxu3 }
 0x109   :  { %v913_v62 = vmul.f32 %v1759_v42, %v618_v58  ;;  %v929_v63 = vmul.f32 %v1759_v42, %v658_v59  ;;  %v541_v0 = vpop.f32.mrf.mxu0  ;;  %v581_v1 = vpop.f32.mrf.mxu1 }
 0x10a   :  { %1578 = vst [vmem:[#allocation8 + $0x28] sm:$0xff] %v1442_v56   ;;  %v882_v8 = vmul.f32 %v1759_v42, %v541_v0  ;;  %v898_v9 = vmul.f32 %v1759_v42, %v581_v1 }
 0x10b   :  { %1586 = vst [vmem:[#allocation8 + $0x68] sm:$0xff] %v1482_v57   ;;  %v981_v2 = vadd.f32 %v1765_v44, %v913_v62  ;;  %v997_v3 = vadd.f32 %v1765_v44, %v929_v63 }
 0x10c   :  { %v950_v16 = vadd.f32 %v1765_v44, %v882_v8  ;;  %v966_v17 = vadd.f32 %v1765_v44, %v898_v9 }
 0x10d   :  { %v1045_v6 = vmax.f32 %v981_v2, 0.0  ;;  %v1061_v7 = vmax.f32 %v997_v3, 0.0 }
 0x10e   :  { %v1014_v24 = vmax.f32 %v950_v16, 0.0  ;;  %v1030_v25 = vmax.f32 %v966_v17, 0.0 }
 0x10f   :  { %v1522_v10 = vpack.c.bf16 %v1045_v6, %v1044_v4  ;;  %v1562_v11 = vpack.c.bf16 %v1061_v7, %v1060_v5 }
 0x110   :  { %v621_v12 = vpop.f32.mrf.mxu2  ;;  %v661_v13 = vpop.f32.mrf.mxu3 }
 0x111   :  { %1594 = vst [vmem:[#allocation8 + $0xa8] sm:$0xff] %v1522_v10   ;;  %v543_v14 = vpop.f32.mrf.mxu0  ;;  %v583_v15 = vpop.f32.mrf.mxu1  ;;  %v914_v22 = vmul.f32 %v1759_v42, %v621_v12  ;;  %v930_v23 = vmul.f32 %v1759_v42, %v661_v13 }
 0x112   :  { %1602 = vst [vmem:[#allocation8 + $0xe8] sm:$0xff] %v1562_v11   ;;  %v883_v18 = vmul.f32 %v1759_v42, %v543_v14  ;;  %v899_v19 = vmul.f32 %v1759_v42, %v583_v15 }
 0x113   :  { %v982_v32 = vadd.f32 %v1765_v44, %v914_v22  ;;  %v998_v33 = vadd.f32 %v1765_v44, %v930_v23 }
 0x114   :  { %v951_v20 = vadd.f32 %v1765_v44, %v883_v18  ;;  %v967_v21 = vadd.f32 %v1765_v44, %v899_v19 }
 0x115   :  { %v1046_v40 = vmax.f32 %v982_v32, 0.0  ;;  %v1062_v41 = vmax.f32 %v998_v33, 0.0 }
 0x116   :  { %v1015_v26 = vmax.f32 %v951_v20, 0.0  ;;  %v1031_v27 = vmax.f32 %v967_v21, 0.0 }
 0x118   :  { %v1447_v28 = vpack.c.bf16 %v1015_v26, %v1014_v24  ;;  %v1487_v29 = vpack.c.bf16 %v1031_v27, %v1030_v25  ;;  %v623_v30 = vpop.f32.mrf.mxu2  ;;  %v663_v31 = vpop.f32.mrf.mxu3 }
 0x119   :  { %v915_v34 = vmul.f32 %v1759_v42, %v623_v30  ;;  %v931_v35 = vmul.f32 %v1759_v42, %v663_v31  ;;  %v546_v36 = vpop.f32.mrf.mxu0  ;;  %v586_v37 = vpop.f32.mrf.mxu1 }
 0x11a   :  { %1579 = vst [vmem:[#allocation8 + $0x30] sm:$0xff] %v1447_v28   ;;  %v884_v46 = vmul.f32 %v1759_v42, %v546_v36  ;;  %v900_v47 = vmul.f32 %v1759_v42, %v586_v37 }
 0x11b   :  { %1587 = vst [vmem:[#allocation8 + $0x70] sm:$0xff] %v1487_v29   ;;  %v983_v38 = vadd.f32 %v1765_v44, %v915_v34  ;;  %v999_v39 = vadd.f32 %v1765_v44, %v931_v35 }
 0x11c   :  { %v952_v54 = vadd.f32 %v1765_v44, %v884_v46  ;;  %v968_v55 = vadd.f32 %v1765_v44, %v900_v47 }
 0x11d   :  { %v1047_v43 = vmax.f32 %v983_v38, 0.0  ;;  %v1063_v45 = vmax.f32 %v999_v39, 0.0 }
 0x11e   :  { %v1016_v62 = vmax.f32 %v952_v54, 0.0  ;;  %v1032_v63 = vmax.f32 %v968_v55, 0.0 }
 0x11f   :  { %v1527_v48 = vpack.c.bf16 %v1047_v43, %v1046_v40  ;;  %v1567_v49 = vpack.c.bf16 %v1063_v45, %v1062_v41 }
 0x120   :  { %v626_v50 = vpop.f32.mrf.mxu2  ;;  %v666_v51 = vpop.f32.mrf.mxu3 }
 0x121   :  { %1595 = vst [vmem:[#allocation8 + $0xb0] sm:$0xff] %v1527_v48   ;;  %v548_v52 = vpop.f32.mrf.mxu0  ;;  %v588_v53 = vpop.f32.mrf.mxu1  ;;  %v916_v60 = vmul.f32 %v1759_v42, %v626_v50  ;;  %v932_v61 = vmul.f32 %v1759_v42, %v666_v51 }
 0x122   :  { %1603 = vst [vmem:[#allocation8 + $0xf0] sm:$0xff] %v1567_v49   ;;  %v885_v56 = vmul.f32 %v1759_v42, %v548_v52  ;;  %v901_v57 = vmul.f32 %v1759_v42, %v588_v53 }
 0x123   :  { %v984_v6 = vadd.f32 %v1765_v44, %v916_v60  ;;  %v1000_v7 = vadd.f32 %v1765_v44, %v932_v61 }
 0x124   :  { %v953_v58 = vadd.f32 %v1765_v44, %v885_v56  ;;  %v969_v59 = vadd.f32 %v1765_v44, %v901_v57 }
 0x125   :  { %v1048_v12 = vmax.f32 %v984_v6, 0.0  ;;  %v1064_v13 = vmax.f32 %v1000_v7, 0.0 }
 0x126   :  { %v1017_v0 = vmax.f32 %v953_v58, 0.0  ;;  %v1033_v1 = vmax.f32 %v969_v59, 0.0 }
 0x128   :  { %v1452_v2 = vpack.c.bf16 %v1017_v0, %v1016_v62  ;;  %v1492_v3 = vpack.c.bf16 %v1033_v1, %v1032_v63  ;;  %v628_v4 = vpop.f32.mrf.mxu2  ;;  %v668_v5 = vpop.f32.mrf.mxu3 }
 0x129   :  { %v917_v8 = vmul.f32 %v1759_v42, %v628_v4  ;;  %v933_v9 = vmul.f32 %v1759_v42, %v668_v5 }
 0x12a   :  { %1580 = vst [vmem:[#allocation8 + $0x38] sm:$0xff] %v1452_v2  }
 0x12b   :  { %1588 = vst [vmem:[#allocation8 + $0x78] sm:$0xff] %v1492_v3   ;;  %v985_v10 = vadd.f32 %v1765_v44, %v917_v8  ;;  %v1001_v11 = vadd.f32 %v1765_v44, %v933_v9 }
 0x12d   :  { %v1049_v14 = vmax.f32 %v985_v10, 0.0  ;;  %v1065_v15 = vmax.f32 %v1001_v11, 0.0 }
 0x12f   :  { %v1532_v16 = vpack.c.bf16 %v1049_v14, %v1048_v12  ;;  %v1572_v17 = vpack.c.bf16 %v1065_v15, %v1064_v13 }
 0x131   :  { %1596 = vst [vmem:[#allocation8 + $0xb8] sm:$0xff] %v1532_v16  }
 0x132   :  { %1604 = vst [vmem:[#allocation8 + $0xf8] sm:$0xff] %v1572_v17  }
 0x133   :  { %1206 = dma.vmem_to_hbm [thread:$0]  %s1199_s3, 4096, %s1201_s5, [#allocation5], %s1715_s23, %s1715_s23, %s1716_s24  }
 0x134   :  { %1712 = dma.done.wait [#allocation5], 4096  }
 0x135   :  { %1713 = vsyncadd [#allocation5], 4294963200 }
 0x136   :  { %1211 = vsyncpa [#allocation4], 1 }
 0x137   :  { %1212 = vsyncpa [#allocation7], 1 }
 0x138   :  { %1213 = vsyncpa [#allocation5], 1 }

</bundles_post_ra>
